<compile_context>
chip_gen: v7x
topology: tpu7x:2x2x1
jax: 0.10.0
libtpu: 0.0.40
codegen_flags: <defaults>
</compile_context>

<pallas_src>
import functools

import jax
import jax.numpy as jnp
from jax.experimental import pallas as pl
from jax.experimental.pallas import tpu as pltpu

HIDDEN = 64


def _round_up(n, m):
    return ((n + m - 1) // m) * m


def _pick_tile_b(batch, feature_dim, action_dim, vmem_budget_bytes):
    """Largest multiple-of-8 batch tile whose VMEM footprint fits the budget."""
    # double-buffered pipeline I/O (x, mu, sigma) + in-kernel f32 temporaries (h1, h2)
    per_row = 2 * (feature_dim + 2 * action_dim) * 4
    per_row += 2 * HIDDEN * 4 + 2 * action_dim * 4
    cap = max(8, (vmem_budget_bytes // per_row) // 8 * 8)
    cap = min(cap, 8192)
    return min(_round_up(batch, 8), cap)


def _batch_dim_semantics():
    """CORE_PARALLEL on v7x (2 TensorCores/chip), plain 'parallel' otherwise."""
    try:
        kind = jax.devices()[0].device_kind.lower()
    except Exception:  # pragma: no cover
        kind = ""
    if "v7" in kind:
        return (pltpu.CORE_PARALLEL,)
    return ("parallel",)


def actor_kernel(x_ref, w1_ref, b1_ref, w2_ref, b2_ref,
                 wmu_ref, bmu_ref, wsig_ref, bsig_ref,
                 mu_ref, sigma_ref):
    x = x_ref[...]

    # shared_net: Linear -> ReLU -> Linear -> ReLU  (f32 accumulation on the MXU)
    h1 = jnp.dot(x, w1_ref[...], preferred_element_type=jnp.float32) + b1_ref[...]
    h1 = jnp.maximum(h1, 0.0)
    h2 = jnp.dot(h1, w2_ref[...], preferred_element_type=jnp.float32) + b2_ref[...]
    h2 = jnp.maximum(h2, 0.0)

    # mu head: tanh(h2 @ Wmu + bmu)  -- compact (tile_b, action_dim) store
    zmu = jnp.dot(h2, wmu_ref[...], preferred_element_type=jnp.float32) + bmu_ref[...]
    mu_ref[...] = jnp.tanh(zmu)

    # sigma head: softplus(h2 @ Ws + bs) + 1e-4 (numerically stable softplus)
    # Note: if a v7x bundle shows the single EUP slot binding, pack several rows'
    # [mu|sigma] into one 128-lane row (XLU shuffle) before the transcendentals.
    zs = jnp.dot(h2, wsig_ref[...], preferred_element_type=jnp.float32) + bsig_ref[...]
    sigma_ref[...] = jnp.maximum(zs, 0.0) + jnp.log1p(jnp.exp(-jnp.abs(zs))) + 1e-4


def actor_forward(x, params, *, tile_b=None, vmem_budget_bytes=12 << 20):
    """Fused actor forward. Returns (mu, sigma), each (batch, action_dim)."""
    w1, b1, w2, b2, wmu, bmu, wsig, bsig = params
    batch, feature_dim = x.shape
    action_dim = wmu.shape[1]

    if tile_b is None:
        tile_b = _pick_tile_b(batch, feature_dim, action_dim, vmem_budget_bytes)
    grid = (pl.cdiv(batch, tile_b),)   # partial trailing block handled by Pallas

    weight_bytes = 4 * (w1.size + b1.size + w2.size + b2.size
                        + wmu.size + bmu.size + wsig.size + bsig.size)
    cost = pl.CostEstimate(
        flops=2 * batch * (feature_dim * HIDDEN + HIDDEN * HIDDEN
                           + 2 * HIDDEN * action_dim),
        transcendentals=3 * batch * action_dim,
        bytes_accessed=4 * (batch * feature_dim + 2 * batch * action_dim)
                       + weight_bytes,
    )

    mu, sigma = pl.pallas_call(
        actor_kernel,
        out_shape=(
            jax.ShapeDtypeStruct((batch, action_dim), jnp.float32),
            jax.ShapeDtypeStruct((batch, action_dim), jnp.float32),
        ),
        grid=grid,
        in_specs=[
            # activations stream over the batch grid
            pl.BlockSpec((tile_b, feature_dim), lambda i: (i, 0)),
            # tiny weights / biases stay resident (same block every grid step)
            pl.BlockSpec((feature_dim, HIDDEN), lambda i: (0, 0)),
            pl.BlockSpec((1, HIDDEN), lambda i: (0, 0)),
            pl.BlockSpec((HIDDEN, HIDDEN), lambda i: (0, 0)),
            pl.BlockSpec((1, HIDDEN), lambda i: (0, 0)),
            pl.BlockSpec((HIDDEN, action_dim), lambda i: (0, 0)),
            pl.BlockSpec((1, action_dim), lambda i: (0, 0)),
            pl.BlockSpec((HIDDEN, action_dim), lambda i: (0, 0)),
            pl.BlockSpec((1, action_dim), lambda i: (0, 0)),
        ],
        out_specs=(
            pl.BlockSpec((tile_b, action_dim), lambda i: (i, 0)),
            pl.BlockSpec((tile_b, action_dim), lambda i: (i, 0)),
        ),
        compiler_params=pltpu.CompilerParams(
            dimension_semantics=_batch_dim_semantics()),
        cost_estimate=cost,
    )(x, w1, b1, w2, b2, wmu, bmu, wsig, bsig)

    return mu, sigma


def init_params(key, feature_dim, action_dim, hidden=HIDDEN):
    """Deterministic synthetic init mirroring the PyTorch module's shapes.

    Hidden linears: uniform(-1/sqrt(fan_in), 1/sqrt(fan_in)) like nn.Linear default.
    mu / sigma weights: uniform(-0.001, 0.001) as in the module's __init__.
    Weights stored [in, out] so the kernel computes x @ W + b (== x @ W_pt.T + b).
    """
    ks = jax.random.split(key, 8)

    def unif(k, shape, lim):
        return jax.random.uniform(k, shape, jnp.float32, -lim, lim)

    w1 = unif(ks[0], (feature_dim, hidden), 1.0 / jnp.sqrt(feature_dim))
    b1 = unif(ks[1], (1, hidden), 1.0 / jnp.sqrt(feature_dim))
    w2 = unif(ks[2], (hidden, hidden), 1.0 / jnp.sqrt(hidden))
    b2 = unif(ks[3], (1, hidden), 1.0 / jnp.sqrt(hidden))
    wmu = unif(ks[4], (hidden, action_dim), 0.001)
    bmu = unif(ks[5], (1, action_dim), 1.0 / jnp.sqrt(hidden))
    wsig = unif(ks[6], (hidden, action_dim), 0.001)
    bsig = unif(ks[7], (1, action_dim), 1.0 / jnp.sqrt(hidden))
    return (w1, b1, w2, b2, wmu, bmu, wsig, bsig)


def reference_forward(x, params):
    w1, b1, w2, b2, wmu, bmu, wsig, bsig = params
    h1 = jax.nn.relu(x @ w1 + b1)
    h2 = jax.nn.relu(h1 @ w2 + b2)
    mu = jnp.tanh(h2 @ wmu + bmu)
    sigma = jax.nn.softplus(h2 @ wsig + bsig) + 1e-4
    return mu, sigma


if __name__ == "__main__":
    feature_dim = 32
    action_dim = 4
    batch = 8

    key = jax.random.PRNGKey(0)
    kx, kp, kx2 = jax.random.split(key, 3)
    x = jax.random.normal(kx, (batch, feature_dim), jnp.float32)
    params = init_params(kp, feature_dim, action_dim)

    mu, sigma = actor_forward(x, params)
    jax.block_until_ready((mu, sigma))

    mu_ref, sigma_ref = reference_forward(x, params)
    assert mu.shape == (batch, action_dim) and sigma.shape == (batch, action_dim)
    assert jnp.allclose(mu, mu_ref, atol=1e-5, rtol=1e-5)
    assert jnp.allclose(sigma, sigma_ref, atol=1e-5, rtol=1e-5)
    assert bool(jnp.all(sigma > 0.0))

    # second check: non-multiple-of-tile batch -> multi-step grid with a
    # partial trailing block (no wrapper-side jnp.pad anymore).
    batch2 = 20
    x2 = jax.random.normal(kx2, (batch2, feature_dim), jnp.float32)
    mu2, sigma2 = actor_forward(x2, params, tile_b=8)
    jax.block_until_ready((mu2, sigma2))
    mu2_ref, sigma2_ref = reference_forward(x2, params)
    assert mu2.shape == (batch2, action_dim) and sigma2.shape == (batch2, action_dim)
    assert jnp.allclose(mu2, mu2_ref, atol=1e-5, rtol=1e-5)
    assert jnp.allclose(sigma2, sigma2_ref, atol=1e-5, rtol=1e-5)
    assert bool(jnp.all(sigma2 > 0.0))

    print("KERNEL_OK")
</pallas_src>

<mosaic_0001>
module attributes {stable_mosaic.version = 11 : i64} {
  func.func @actor_kernel(%arg0: i32, %arg1: memref<8x32xf32, #tpu.memory_space<vmem>>, %arg2: memref<32x64xf32, #tpu.memory_space<vmem>>, %arg3: memref<1x64xf32, #tpu.memory_space<vmem>>, %arg4: memref<64x64xf32, #tpu.memory_space<vmem>>, %arg5: memref<1x64xf32, #tpu.memory_space<vmem>>, %arg6: memref<64x4xf32, #tpu.memory_space<vmem>>, %arg7: memref<1x4xf32, #tpu.memory_space<vmem>>, %arg8: memref<64x4xf32, #tpu.memory_space<vmem>>, %arg9: memref<1x4xf32, #tpu.memory_space<vmem>>, %arg10: memref<8x4xf32, #tpu.memory_space<vmem>>, %arg11: memref<8x4xf32, #tpu.memory_space<vmem>>) attributes {dimension_semantics = [#tpu.dimension_semantics<parallel>], iteration_bounds = array<i64: 1>, scalar_prefetch = 0 : i64, scratch_operands = 0 : i64, tpu.core_type = #tpu.core_type<tc>, window_params = [{transform_indices = @transform_0, window_bounds = array<i64: 8, 32>}, {pipeline_mode = #tpu.pipeline_mode<synchronous>, transform_indices = @transform_1, window_bounds = array<i64: 32, 64>}, {pipeline_mode = #tpu.pipeline_mode<synchronous>, transform_indices = @transform_2, window_bounds = array<i64: 1, 64>}, {pipeline_mode = #tpu.pipeline_mode<synchronous>, transform_indices = @transform_3, window_bounds = array<i64: 64, 64>}, {pipeline_mode = #tpu.pipeline_mode<synchronous>, transform_indices = @transform_4, window_bounds = array<i64: 1, 64>}, {pipeline_mode = #tpu.pipeline_mode<synchronous>, transform_indices = @transform_5, window_bounds = array<i64: 64, 4>}, {pipeline_mode = #tpu.pipeline_mode<synchronous>, transform_indices = @transform_6, window_bounds = array<i64: 1, 4>}, {pipeline_mode = #tpu.pipeline_mode<synchronous>, transform_indices = @transform_7, window_bounds = array<i64: 64, 4>}, {pipeline_mode = #tpu.pipeline_mode<synchronous>, transform_indices = @transform_8, window_bounds = array<i64: 1, 4>}, {transform_indices = @transform_9, window_bounds = array<i64: 8, 4>}, {transform_indices = @transform_10, window_bounds = array<i64: 8, 4>}]} {
    %c0 = arith.constant 0 : index
    %c0_0 = arith.constant 0 : index
    %0 = vector.load %arg1[%c0, %c0_0] : memref<8x32xf32, #tpu.memory_space<vmem>>, vector<8x32xf32>
    %c0_1 = arith.constant 0 : index
    %c0_2 = arith.constant 0 : index
    %1 = vector.load %arg2[%c0_1, %c0_2] : memref<32x64xf32, #tpu.memory_space<vmem>>, vector<32x64xf32>
    %cst = arith.constant dense<0.000000e+00> : vector<8x64xf32>
    %2 = tpu.matmul %0, %1, %cst {dimension_numbers = #tpu.dot_dimension_numbers<[1], [0], [0], [1], [0, 0, 1, 1], [], []>} : vector<8x32xf32>, vector<32x64xf32>, vector<8x64xf32> -> vector<8x64xf32>
    %c0_3 = arith.constant 0 : index
    %c0_4 = arith.constant 0 : index
    %3 = vector.load %arg3[%c0_3, %c0_4] : memref<1x64xf32, #tpu.memory_space<vmem>>, vector<1x64xf32>
    %4 = vector.broadcast %3 : vector<1x64xf32> to vector<8x64xf32>
    %5 = arith.addf %2, %4 : vector<8x64xf32>
    %cst_5 = arith.constant 0.000000e+00 : f32
    %6 = vector.broadcast %cst_5 : f32 to vector<8x64xf32>
    %7 = arith.maximumf %5, %6 : vector<8x64xf32>
    %c0_6 = arith.constant 0 : index
    %c0_7 = arith.constant 0 : index
    %8 = vector.load %arg4[%c0_6, %c0_7] : memref<64x64xf32, #tpu.memory_space<vmem>>, vector<64x64xf32>
    %cst_8 = arith.constant dense<0.000000e+00> : vector<8x64xf32>
    %9 = tpu.matmul %7, %8, %cst_8 {dimension_numbers = #tpu.dot_dimension_numbers<[1], [0], [0], [1], [0, 0, 1, 1], [], []>} : vector<8x64xf32>, vector<64x64xf32>, vector<8x64xf32> -> vector<8x64xf32>
    %c0_9 = arith.constant 0 : index
    %c0_10 = arith.constant 0 : index
    %10 = vector.load %arg5[%c0_9, %c0_10] : memref<1x64xf32, #tpu.memory_space<vmem>>, vector<1x64xf32>
    %11 = vector.broadcast %10 : vector<1x64xf32> to vector<8x64xf32>
    %12 = arith.addf %9, %11 : vector<8x64xf32>
    %cst_11 = arith.constant 0.000000e+00 : f32
    %13 = vector.broadcast %cst_11 : f32 to vector<8x64xf32>
    %14 = arith.maximumf %12, %13 : vector<8x64xf32>
    %c0_12 = arith.constant 0 : index
    %c0_13 = arith.constant 0 : index
    %15 = vector.load %arg6[%c0_12, %c0_13] : memref<64x4xf32, #tpu.memory_space<vmem>>, vector<64x4xf32>
    %cst_14 = arith.constant dense<0.000000e+00> : vector<8x4xf32>
    %16 = tpu.matmul %14, %15, %cst_14 {dimension_numbers = #tpu.dot_dimension_numbers<[1], [0], [0], [1], [0, 0, 1, 1], [], []>} : vector<8x64xf32>, vector<64x4xf32>, vector<8x4xf32> -> vector<8x4xf32>
    %c0_15 = arith.constant 0 : index
    %c0_16 = arith.constant 0 : index
    %17 = vector.load %arg7[%c0_15, %c0_16] : memref<1x4xf32, #tpu.memory_space<vmem>>, vector<1x4xf32>
    %18 = vector.broadcast %17 : vector<1x4xf32> to vector<8x4xf32>
    %19 = arith.addf %16, %18 : vector<8x4xf32>
    %20 = math.tanh %19 : vector<8x4xf32>
    %c0_17 = arith.constant 0 : index
    %c0_18 = arith.constant 0 : index
    %21 = vector.load %arg10[%c0_17, %c0_18] : memref<8x4xf32, #tpu.memory_space<vmem>>, vector<8x4xf32>
    tpu.vector_store %arg10[%c0_17, %c0_18], %20 {strides = array<i32>} : memref<8x4xf32, #tpu.memory_space<vmem>>, vector<8x4xf32>,
    %c0_19 = arith.constant 0 : index
    %c0_20 = arith.constant 0 : index
    %22 = vector.load %arg8[%c0_19, %c0_20] : memref<64x4xf32, #tpu.memory_space<vmem>>, vector<64x4xf32>
    %cst_21 = arith.constant dense<0.000000e+00> : vector<8x4xf32>
    %23 = tpu.matmul %14, %22, %cst_21 {dimension_numbers = #tpu.dot_dimension_numbers<[1], [0], [0], [1], [0, 0, 1, 1], [], []>} : vector<8x64xf32>, vector<64x4xf32>, vector<8x4xf32> -> vector<8x4xf32>
    %c0_22 = arith.constant 0 : index
    %c0_23 = arith.constant 0 : index
    %24 = vector.load %arg9[%c0_22, %c0_23] : memref<1x4xf32, #tpu.memory_space<vmem>>, vector<1x4xf32>
    %25 = vector.broadcast %24 : vector<1x4xf32> to vector<8x4xf32>
    %26 = arith.addf %23, %25 : vector<8x4xf32>
    %cst_24 = arith.constant 0.000000e+00 : f32
    %27 = vector.broadcast %cst_24 : f32 to vector<8x4xf32>
    %28 = arith.maximumf %26, %27 : vector<8x4xf32>
    %29 = math.absf %26 : vector<8x4xf32>
    %cst_25 = arith.constant 0.000000e+00 : f32
    %30 = vector.broadcast %cst_25 : f32 to vector<8x4xf32>
    %31 = arith.subf %30, %29 : vector<8x4xf32>
    %32 = math.exp %31 : vector<8x4xf32>
    %33 = math.log1p %32 : vector<8x4xf32>
    %34 = arith.addf %28, %33 : vector<8x4xf32>
    %cst_26 = arith.constant 9.99999974E-5 : f32
    %35 = vector.broadcast %cst_26 : f32 to vector<8x4xf32>
    %36 = arith.addf %34, %35 : vector<8x4xf32>
    %c0_27 = arith.constant 0 : index
    %c0_28 = arith.constant 0 : index
    %37 = vector.load %arg11[%c0_27, %c0_28] : memref<8x4xf32, #tpu.memory_space<vmem>>, vector<8x4xf32>
    tpu.vector_store %arg11[%c0_27, %c0_28], %36 {strides = array<i32>} : memref<8x4xf32, #tpu.memory_space<vmem>>, vector<8x4xf32>,
    return
  }
  func.func @transform_0(%arg0: i32) -> (i32, i32) {
    %c0_i32 = arith.constant 0 : i32
    %c0_i32_0 = arith.constant 0 : i32
    return %arg0, %c0_i32 : i32, i32
  }
  func.func @transform_1(%arg0: i32) -> (i32, i32) {
    %c0_i32 = arith.constant 0 : i32
    %c0_i32_0 = arith.constant 0 : i32
    %c0_i32_1 = arith.constant 0 : i32
    return %c0_i32, %c0_i32_0 : i32, i32
  }
  func.func @transform_2(%arg0: i32) -> (i32, i32) {
    %c0_i32 = arith.constant 0 : i32
    %c0_i32_0 = arith.constant 0 : i32
    %c0_i32_1 = arith.constant 0 : i32
    return %c0_i32, %c0_i32_0 : i32, i32
  }
  func.func @transform_3(%arg0: i32) -> (i32, i32) {
    %c0_i32 = arith.constant 0 : i32
    %c0_i32_0 = arith.constant 0 : i32
    %c0_i32_1 = arith.constant 0 : i32
    return %c0_i32, %c0_i32_0 : i32, i32
  }
  func.func @transform_4(%arg0: i32) -> (i32, i32) {
    %c0_i32 = arith.constant 0 : i32
    %c0_i32_0 = arith.constant 0 : i32
    %c0_i32_1 = arith.constant 0 : i32
    return %c0_i32, %c0_i32_0 : i32, i32
  }
  func.func @transform_5(%arg0: i32) -> (i32, i32) {
    %c0_i32 = arith.constant 0 : i32
    %c0_i32_0 = arith.constant 0 : i32
    %c0_i32_1 = arith.constant 0 : i32
    return %c0_i32, %c0_i32_0 : i32, i32
  }
  func.func @transform_6(%arg0: i32) -> (i32, i32) {
    %c0_i32 = arith.constant 0 : i32
    %c0_i32_0 = arith.constant 0 : i32
    %c0_i32_1 = arith.constant 0 : i32
    return %c0_i32, %c0_i32_0 : i32, i32
  }
  func.func @transform_7(%arg0: i32) -> (i32, i32) {
    %c0_i32 = arith.constant 0 : i32
    %c0_i32_0 = arith.constant 0 : i32
    %c0_i32_1 = arith.constant 0 : i32
    return %c0_i32, %c0_i32_0 : i32, i32
  }
  func.func @transform_8(%arg0: i32) -> (i32, i32) {
    %c0_i32 = arith.constant 0 : i32
    %c0_i32_0 = arith.constant 0 : i32
    %c0_i32_1 = arith.constant 0 : i32
    return %c0_i32, %c0_i32_0 : i32, i32
  }
  func.func @transform_9(%arg0: i32) -> (i32, i32) {
    %c0_i32 = arith.constant 0 : i32
    %c0_i32_0 = arith.constant 0 : i32
    return %arg0, %c0_i32 : i32, i32
  }
  func.func @transform_10(%arg0: i32) -> (i32, i32) {
    %c0_i32 = arith.constant 0 : i32
    %c0_i32_0 = arith.constant 0 : i32
    return %arg0, %c0_i32 : i32, i32
  }
}

</mosaic_0001>

<bundles_post_ra>
// kernel: tpu_custom_call.1
= control target key start
LH: loop header
LB: loop body
LE: loop exit
PB: predicated region body
PF: predicated region fallthrough
CT: control target
= control target key end

     0   :  { %v571_v0 = vmov 0.0|0.0   ;;  %vm572_vm0 = vmmov 0   ;;  %v573_v4 = vmov 0.0   ;;  %vm46_vm1 = vcmask 261120   ;;  %s761_s1 = inlined_call_operand.vmem [shape: f32[32,64], index: 1, kind: input, shape index: {}]   ;;  %s762_s3 = inlined_call_operand.vmem [shape: f32[64,64], index: 3, kind: input, shape index: {}]   ;;  %s763_s0 = inlined_call_operand.vmem [shape: f32[8,32], index: 0, kind: input, shape index: {}]   ;;  %s764_s5 = inlined_call_operand.vmem [shape: f32[64,4], index: 5, kind: input, shape index: {}]   ;;  %s765_s2 = inlined_call_operand.vmem [shape: f32[1,64], index: 2, kind: input, shape index: {}]   ;;  %s766_s7 = inlined_call_operand.vmem [shape: f32[64,4], index: 7, kind: input, shape index: {}]   ;;  %s767_s4 = inlined_call_operand.vmem [shape: f32[1,64], index: 4, kind: input, shape index: {}]   ;;  %s768_s6 = inlined_call_operand.vmem [shape: f32[1,4], index: 6, kind: input, shape index: {}]   ;;  %s769_s8 = inlined_call_operand.vmem [shape: f32[1,4], index: 8, kind: input, shape index: {}]   ;;  %s770_s9 = inlined_call_operand.vmem [shape: f32[8,4], index: 9, kind: output, shape index: {0}]   ;;  %s771_s10 = inlined_call_operand.vmem [shape: f32[8,4], index: 10, kind: output, shape index: {1}]  }
   0x1   :  { %520 = vmatprep.subr.bf16.mxu0 %v571_v0  ;;  %v35_v1 = vld [vmem:[%s761_s1] sm:$0xff]  ;;  %v36_v2 = vld [vmem:[%s761_s1 + $0x8] sm:$0xff]  ;;  %v37_v3 = vld [vmem:[%s761_s1 + $0x10] sm:$0xff]  ;;  %460 = vmatprep.mubr.msk.f32.mxu0 %vm572_vm0, %v573_v4  ;;  %vm136_vm2 = vcmask 523264   ;;  %vm300_vm3 = vcmask 31744  }
   0x2   :  { %v521_v5 = vpack.c.bf16 %v36_v2, %v35_v1  ;;  %v38_v6 = vld [vmem:[%s761_s1 + $0x18] sm:$0xff]  ;;  %526 = vmatprep.subr.bf16.mxu1 %v571_v0  ;;  %v121_v7 = vld [vmem:[%s762_s3] sm:$0xff]  ;;  %479 = vmatprep.mubr.msk.f32.mxu1 %vm572_vm0, %v573_v4  ;;  %v122_v8 = vld [vmem:[%s762_s3 + $0x8] sm:$0xff] }
   0x3   :  { %v123_v9 = vld [vmem:[%s762_s3 + $0x10] sm:$0xff]  ;;  %v124_v10 = vld [vmem:[%s762_s3 + $0x18] sm:$0xff]  ;;  %v524_v11 = vpack.c.bf16 %v38_v6, %v37_v3  ;;  %v527_v12 = vpack.c.bf16 %v122_v8, %v121_v7  ;;  %v125_v14 = vld [vmem:[%s762_s3 + $0x20] sm:$0xff] }
   0x4   :  { %522 = vmatpush3.bf16.msra.mxu0 %v521_v5  ;;  %v530_v13 = vpack.c.bf16 %v124_v10, %v123_v9  ;;  %v126_v15 = vld [vmem:[%s762_s3 + $0x28] sm:$0xff]  ;;  %v34_v16 = vld [vmem:[%s763_s0] sm:$0xff]  ;;  %v127_v18 = vld [vmem:[%s762_s3 + $0x30] sm:$0xff] }
   0x5   :  { %523 = vmatprep.subr.bf16.mxu0 %v571_v0  ;;  %528 = vmatpush3.bf16.msra.mxu1 %v527_v12  ;;  %v533_v17 = vpack.c.bf16 %v126_v15, %v125_v14  ;;  %v128_v19 = vld [vmem:[%s762_s3 + $0x38] sm:$0xff]  ;;  %v211_v21 = vld [vmem:[%s764_s5] sm:$0xff]  ;;  %v212_v22 = vld [vmem:[%s764_s5 + $0x8] sm:$0xff] }
   0x6   :  { %529 = vmatprep.subr.bf16.mxu1 %v571_v0  ;;  %v536_v20 = vpack.c.bf16 %v128_v19, %v127_v18  ;;  %v539_v23 = vpack.c.bf16 %v212_v22, %v211_v21  ;;  %v213_v24 = vld [vmem:[%s764_s5 + $0x10] sm:$0xff]  ;;  %v214_v25 = vld [vmem:[%s764_s5 + $0x18] sm:$0xff]  ;;  %v215_v27 = vld [vmem:[%s764_s5 + $0x20] sm:$0xff] }
   0x7   :  { %v542_v26 = vpack.c.bf16 %v214_v25, %v213_v24  ;;  %v216_v28 = vld [vmem:[%s764_s5 + $0x28] sm:$0xff]  ;;  %v412_v30 = vld [vmem:[%s765_s2] ss:$0 sm:$0xff]  ;;  %v304_v38 = vld [vmem:[%s766_s7 + $0x10] sm:$0xff] }
   0x8   :  { %525 = vmatpush3.bf16.msra.mxu0 %v524_v11  ;;  %v545_v29 = vpack.c.bf16 %v216_v28, %v215_v27  ;;  %v302_v31 = vld [vmem:[%s766_s7] sm:$0xff]  ;;  %v303_v32 = vld [vmem:[%s766_s7 + $0x8] sm:$0xff]  ;;  %v305_v39 = vld [vmem:[%s766_s7 + $0x18] sm:$0xff] }
   0x9   :  { %538 = vmatprep.subr.bf16.mxu0 %v571_v0  ;;  %531 = vmatpush3.bf16.msra.mxu1 %v530_v13  ;;  %v551_v36 = vpack.c.bf16 %v303_v32, %v302_v31  ;;  %v554_v40 = vpack.c.bf16 %v305_v39, %v304_v38  ;;  %v306_v41 = vld [vmem:[%s766_s7 + $0x20] sm:$0xff]  ;;  %v307_v42 = vld [vmem:[%s766_s7 + $0x28] sm:$0xff]  ;;  %v217_v44 = vld [vmem:[%s764_s5 + $0x30] sm:$0xff] }
   0xa   :  { %532 = vmatprep.subr.bf16.mxu1 %v571_v0  ;;  %v557_v43 = vpack.c.bf16 %v307_v42, %v306_v41  ;;  %v218_v45 = vld [vmem:[%s764_s5 + $0x38] sm:$0xff]  ;;  %v308_v46 = vld [vmem:[%s766_s7 + $0x30] sm:$0xff]  ;;  %v414_v50 = vld [vmem:[%s767_s4] ss:$0 sm:$0xff] }
   0xb   :  { %461 = vmatmul.mubr.msk.f32.vlgmr.msra.gmra.mrb[0].mxu0 %vm46_vm1, %v34_v16  ;;  %v548_v47 = vpack.c.bf16 %v218_v45, %v217_v44  ;;  %v309_v48 = vld [vmem:[%s766_s7 + $0x38] sm:$0xff]  ;;  %v416_v55 = vld [vmem:[%s768_s6] ss:$0 sm:$0xff] }
   0xc   :  { %498 = vmatprep.mubr.msk.f32.mxu0 %vm572_vm0, %v573_v4  ;;  %540 = vmatpush3.bf16.msra.mxu0 %v539_v23  ;;  %v560_v49 = vpack.c.bf16 %v309_v48, %v308_v46  ;;  %v418_v56 = vld [vmem:[%s769_s8] ss:$0 sm:$0xff] }
   0xd   :  { %534 = vmatpush3.bf16.msra.mxu1 %v533_v17  ;;  %541 = vmatprep.subr.bf16.mxu0 %v571_v0 }
   0xe   :  { %535 = vmatprep.subr.bf16.mxu1 %v571_v0 }
  0x10   :  { %543 = vmatpush3.bf16.msra.mxu0 %v542_v26 }
  0x11   :  { %537 = vmatpush3.bf16.msra.mxu1 %v536_v20  ;;  %544 = vmatprep.subr.bf16.mxu0 %v571_v0 }
  0x12   :  { %550 = vmatprep.subr.bf16.mxu1 %v571_v0 }
  0x14   :  { %546 = vmatpush3.bf16.msra.mxu0 %v545_v29 }
  0x15   :  { %547 = vmatprep.subr.bf16.mxu0 %v571_v0 }
  0x18   :  { %549 = vmatpush3.bf16.msra.mxu0 %v548_v47 }
  0xde   :  { %v116_v33 = vpop.f32.mrb[0].mxu0 }
  0xdf   :  { %v117_v34 = vadd.f32 %v412_v30, %v116_v33  ;;  %v462_v35 = vpop.f32.mrb[1].mxu0 }
  0xe1   :  { %v120_v37 = vmax.f32 %v117_v34, 0.0 }
  0xe3   :  { %480 = vmatmul.mubr.msk.f32.vlgmr.msra.gmra.mrb[0].mxu1 %vm136_vm2, %v120_v37 }
  0xe4   :  { %552 = vmatpush3.bf16.msra.mxu1 %v551_v36  ;;  %517 = vmatprep.mubr.msk.f32.mxu1 %vm572_vm0, %v573_v4 }
  0xe5   :  { %553 = vmatprep.subr.bf16.mxu1 %v571_v0 }
  0xe8   :  { %555 = vmatpush3.bf16.msra.mxu1 %v554_v40 }
  0xe9   :  { %556 = vmatprep.subr.bf16.mxu1 %v571_v0 }
  0xec   :  { %558 = vmatpush3.bf16.msra.mxu1 %v557_v43 }
  0xed   :  { %559 = vmatprep.subr.bf16.mxu1 %v571_v0 }
  0xf0   :  { %561 = vmatpush3.bf16.msra.mxu1 %v560_v49 }
 0x1b6   :  { %v206_v51 = vpop.f32.mrb[0].mxu1 }
 0x1b7   :  { %v207_v52 = vadd.f32 %v414_v50, %v206_v51  ;;  %v481_v53 = vpop.f32.mrb[1].mxu1 }
 0x1b9   :  { %v210_v54 = vmax.f32 %v207_v52, 0.0 }
 0x1bb   :  { %499 = vmatmul.mubr.msk.f32.vlgmr.msra.gmra.mrb[2].mxu0 %vm136_vm2, %v210_v54  ;;  %518 = vmatmul.mubr.msk.f32.vlgmr.msra.gmra.mrb[2].mxu1 %vm136_vm2, %v210_v54 }
 0x28e   :  { %v295_v57 = vpop.f32.mrb[2].mxu0  ;;  %v383_v58 = vpop.f32.mrb[2].mxu1 }
 0x28f   :  { %v296_v59 = vadd.f32 %v416_v55, %v295_v57  ;;  %v384_v60 = vadd.f32 %v418_v56, %v383_v58  ;;  %v500_v61 = vpop.f32.mrb[3].mxu0  ;;  %v519_v62 = vpop.f32.mrb[3].mxu1 }
 0x291   :  { %565 = vtanh.f32 %v296_v59  ;;  %v388_v63 = vand.u32 2147483647, %v384_v60  ;;  %v387_v11 = vmax.f32 %v384_v60, 0.0 }
 0x293   :  { %v389_v0 = vsub.f32 0.0, %v388_v63 }
 0x295   :  { %v390_v1 = vmul.f32 1.442695, %v389_v0 }
 0x297   :  { %567 = vpow2.f32 %v390_v1 }
 0x29b   :  { %v566_v2 = vpop.eup %565 }
 0x29c   :  { %301 = vst.msk [vmem:[%s770_s9] sm:$0xff] %vm300_vm3, %v566_v2 }
 0x2a1   :  { %v568_v3 = vpop.eup %567 }
 0x2a2   :  { %v392_v4 = vadd.f32 1.0, %v568_v3  ;;  %v395_v5 = vmul.f32 -0.5, %v568_v3  ;;  %v398_v7 = vand.u32 2147483647, %v568_v3 }
 0x2a4   :  { %569 = vlog2.f32 %v392_v4  ;;  %v396_v6 = vadd.f32 1.0, %v395_v5  ;;  %vm399_vm4 = vcmp.lt.f32.partialorder %v398_v7, 0.0004427343 }
 0x2a6   :  { %v397_v10 = vmul.f32 %v568_v3, %v396_v6 }
 0x2ae   :  { %v570_v8 = vpop.eup %569 }
 0x2af   :  { %v394_v9 = vmul.f32 0.6931472, %v570_v8 }
 0x2b1   :  { %v400_v12 = vsel %vm399_vm4, %v397_v10, %v394_v9 }
 0x2b2   :  { %v401_v13 = vadd.f32 %v400_v12, %v387_v11 }
 0x2b4   :  { %v402_v14 = vadd.f32 0.0001, %v401_v13 }
 0x2b6   :  { %403 = vst.msk [vmem:[%s771_s10] sm:$0xff] %vm300_vm3, %v402_v14 }

</bundles_post_ra>
